<compile_context>
chip_gen: v5e
topology: v5e:2x2
jax: 0.10.0
libtpu: 0.0.40
codegen_flags: <defaults>
</compile_context>

<pallas_src>
import functools

import jax
import jax.numpy as jnp
from jax import lax
from jax.experimental import pallas as pl
from jax.experimental.pallas import tpu as pltpu


def _twos_i32(v):
    """Python int -> two's-complement int32 value (as a Python int)."""
    v &= 0xFFFFFFFF
    if v >= 0x80000000:
        v -= 0x100000000
    return v


_GOLDEN = _twos_i32(0x9E3779B9)
_C1 = _twos_i32(0x85EBCA6B)
_C2 = _twos_i32(0xC2B2AE35)


def _randmult_kernel(seed_ref, x_ref, o_ref, *, fac, n_cols):
    # seed_ref: SMEM scalar-prefetch ref holding the base seed (int32).
    tm, tn = x_ref.shape

    # Global linear element index of every element in this block (int32).
    row0 = pl.program_id(0) * tm
    rows = lax.broadcasted_iota(jnp.int32, (tm, tn), 0) + row0
    cols = lax.broadcasted_iota(jnp.int32, (tm, tn), 1)
    idx = rows * jnp.int32(n_cols) + cols

    # Stateless counter-based hash (xorshift-multiply mixer) -> U[0,1).
    # Only int32 xor / mul / shift / and -> portable to Mosaic and interpret mode.
    seed = seed_ref[0] * jnp.int32(_GOLDEN)
    h = idx ^ seed
    h = h * jnp.int32(_C1)
    h = h ^ (h >> 15)
    h = h * jnp.int32(_C2)
    h = h ^ (h >> 16)
    mant = h & jnp.int32(0x7FFFFF)                      # 23 random bits, >= 0
    u = mant.astype(jnp.float32) * jnp.float32(1.0 / (1 << 23))   # [0, 1)

    # multiplier = (1 - fac) + u * 2 * fac  in [1-fac, 1+fac)
    mult = u * jnp.float32(2.0 * fac) + jnp.float32(1.0 - fac)
    o_ref[...] = (x_ref[...].astype(jnp.float32) * mult).astype(o_ref.dtype)


def _round_up(a, b):
    return ((a + b - 1) // b) * b


def rand_mult(x, seed, *, fac=0.06, training=True):
    """Pallas implementation of RandMult.forward."""
    if not training:
        # Eval mode: multiplier is 1 - fac + fac == 1.0 exactly -> identity.
        return x

    orig_shape = x.shape
    dtype = x.dtype
    total = x.size
    itemsize = jnp.dtype(dtype).itemsize

    # Lane width: wide (lane-dense, unmasked wide stores) for big tensors.
    n = 1024 if total >= 8 * 1024 else 128
    m = -(-total // n)  # cdiv

    # Rows per block: target ~2 MiB per input tile (so in+out double-buffered
    # stays well under the scoped-VMEM default on v5e/v6e/v7x).
    target_block_bytes = 2 * 1024 * 1024
    tm_cap = max(8, target_block_bytes // (n * itemsize))
    tm = min(int(tm_cap), _round_up(m, 8))
    tm = _round_up(tm, 8)

    # Pad the flat array to a whole number of (tm, n) blocks.
    m_pad = _round_up(m, tm)
    total_pad = m_pad * n
    flat = x.reshape(-1)
    if total_pad != total:
        flat = jnp.pad(flat, (0, total_pad - total))
    x2 = flat.reshape(m_pad, n)

    seed_arr = jnp.asarray([seed], dtype=jnp.int32)

    grid_spec = pltpu.PrefetchScalarGridSpec(
        num_scalar_prefetch=1,
        grid=(m_pad // tm,),
        in_specs=[pl.BlockSpec((tm, n), lambda i, s: (i, 0))],
        out_specs=pl.BlockSpec((tm, n), lambda i, s: (i, 0)),
    )

    cost = pl.CostEstimate(
        flops=10 * total_pad,
        transcendentals=0,
        bytes_accessed=2 * total_pad * itemsize,
    )

    out2 = pl.pallas_call(
        functools.partial(_randmult_kernel, fac=float(fac), n_cols=n),
        out_shape=jax.ShapeDtypeStruct((m_pad, n), dtype),
        grid_spec=grid_spec,
        compiler_params=pltpu.CompilerParams(
            dimension_semantics=("parallel",),   # blocks independent -> v7x 2-TC split
            vmem_limit_bytes=32 * 1024 * 1024,
        ),
        cost_estimate=cost,
    )(seed_arr, x2)

    out_flat = out2.reshape(-1)
    if total_pad != total:
        out_flat = out_flat[:total]
    return out_flat.reshape(orig_shape)


if __name__ == "__main__":
    key = jax.random.PRNGKey(0)
    # NCHW input, small shapes: batch=2, channels=4, spatial=16x16.
    x = jax.random.normal(key, (2, 4, 16, 16), dtype=jnp.float32)

    fac = 0.06
    out = jax.block_until_ready(rand_mult(x, seed=0, fac=fac, training=True))
    assert out.shape == x.shape and out.dtype == x.dtype

    # Sanity: elementwise ratio must lie in [1 - fac, 1 + fac), and be random.
    safe_x = jnp.where(x == 0, 1.0, x)
    ratio = jnp.where(x == 0, 1.0, out / safe_x)
    assert bool(jnp.all(ratio >= 1.0 - fac - 1e-5))
    assert bool(jnp.all(ratio <= 1.0 + fac + 1e-5))
    assert float(jnp.std(ratio)) > 1e-4  # multipliers are not constant

    # Eval-mode path is identity.
    out_eval = jax.block_until_ready(rand_mult(x, seed=0, fac=fac, training=False))
    assert bool(jnp.all(out_eval == x))

    print("KERNEL_OK")
</pallas_src>

<mosaic_0001>
module attributes {stable_mosaic.version = 11 : i64} {
  func.func @_randmult_kernel(%arg0: i32, %arg1: memref<1xi32, #tpu.memory_space<smem>>, %arg2: memref<16x128xf32, #tpu.memory_space<vmem>>, %arg3: memref<16x128xf32, #tpu.memory_space<vmem>>) attributes {dimension_semantics = [#tpu.dimension_semantics<parallel>], iteration_bounds = array<i64: 1>, scalar_prefetch = 1 : i64, scratch_operands = 0 : i64, tpu.core_type = #tpu.core_type<tc>, window_params = [{transform_indices = @transform_0, window_bounds = array<i64: 16, 128>}, {transform_indices = @transform_1, window_bounds = array<i64: 16, 128>}]} {
    %c16_i32 = arith.constant 16 : i32
    %0 = arith.muli %arg0, %c16_i32 : i32
    %1 = tpu.iota {dimensions = array<i32: 0>} : vector<16x128xi32>
    %2 = vector.broadcast %0 : i32 to vector<16x128xi32>
    %3 = arith.addi %1, %2 : vector<16x128xi32>
    %4 = tpu.iota {dimensions = array<i32: 1>} : vector<16x128xi32>
    %c128_i32 = arith.constant 128 : i32
    %5 = vector.broadcast %c128_i32 : i32 to vector<16x128xi32>
    %6 = arith.muli %3, %5 : vector<16x128xi32>
    %7 = arith.addi %6, %4 : vector<16x128xi32>
    %c0 = arith.constant 0 : index
    %8 = memref.load %arg1[%c0] : memref<1xi32, #tpu.memory_space<smem>>
    %c-1640531527_i32 = arith.constant -1640531527 : i32
    %9 = arith.muli %8, %c-1640531527_i32 : i32
    %10 = vector.broadcast %9 : i32 to vector<16x128xi32>
    %11 = arith.xori %7, %10 : vector<16x128xi32>
    %c-2048144789_i32 = arith.constant -2048144789 : i32
    %12 = vector.broadcast %c-2048144789_i32 : i32 to vector<16x128xi32>
    %13 = arith.muli %11, %12 : vector<16x128xi32>
    %c15_i32 = arith.constant 15 : i32
    %14 = vector.broadcast %c15_i32 : i32 to vector<16x128xi32>
    %15 = arith.shrsi %13, %14 : vector<16x128xi32>
    %16 = arith.xori %13, %15 : vector<16x128xi32>
    %c-1028477387_i32 = arith.constant -1028477387 : i32
    %17 = vector.broadcast %c-1028477387_i32 : i32 to vector<16x128xi32>
    %18 = arith.muli %16, %17 : vector<16x128xi32>
    %c16_i32_0 = arith.constant 16 : i32
    %19 = vector.broadcast %c16_i32_0 : i32 to vector<16x128xi32>
    %20 = arith.shrsi %18, %19 : vector<16x128xi32>
    %21 = arith.xori %18, %20 : vector<16x128xi32>
    %c8388607_i32 = arith.constant 8388607 : i32
    %22 = vector.broadcast %c8388607_i32 : i32 to vector<16x128xi32>
    %23 = arith.andi %21, %22 : vector<16x128xi32>
    %24 = arith.sitofp %23 : vector<16x128xi32> to vector<16x128xf32>
    %cst = arith.constant 1.1920929E-7 : f32
    %25 = vector.broadcast %cst : f32 to vector<16x128xf32>
    %26 = arith.mulf %24, %25 : vector<16x128xf32>
    %cst_1 = arith.constant 1.200000e-01 : f32
    %27 = vector.broadcast %cst_1 : f32 to vector<16x128xf32>
    %28 = arith.mulf %26, %27 : vector<16x128xf32>
    %cst_2 = arith.constant 0.939999997 : f32
    %29 = vector.broadcast %cst_2 : f32 to vector<16x128xf32>
    %30 = arith.addf %28, %29 : vector<16x128xf32>
    %c0_3 = arith.constant 0 : index
    %c0_4 = arith.constant 0 : index
    %31 = vector.load %arg2[%c0_3, %c0_4] : memref<16x128xf32, #tpu.memory_space<vmem>>, vector<16x128xf32>
    %32 = arith.mulf %31, %30 : vector<16x128xf32>
    %c0_5 = arith.constant 0 : index
    %c0_6 = arith.constant 0 : index
    %33 = vector.load %arg3[%c0_5, %c0_6] : memref<16x128xf32, #tpu.memory_space<vmem>>, vector<16x128xf32>
    tpu.vector_store %arg3[%c0_5, %c0_6], %32 {strides = array<i32>} : memref<16x128xf32, #tpu.memory_space<vmem>>, vector<16x128xf32>,
    return
  }
  func.func @transform_0(%arg0: i32, %arg1: memref<1xi32, #tpu.memory_space<smem>>) -> (i32, i32) {
    %c0_i32 = arith.constant 0 : i32
    %c0_i32_0 = arith.constant 0 : i32
    return %arg0, %c0_i32 : i32, i32
  }
  func.func @transform_1(%arg0: i32, %arg1: memref<1xi32, #tpu.memory_space<smem>>) -> (i32, i32) {
    %c0_i32 = arith.constant 0 : i32
    %c0_i32_0 = arith.constant 0 : i32
    return %arg0, %c0_i32 : i32, i32
  }
}

</mosaic_0001>

<bundles_post_ra>
// kernel: tpu_custom_call.1
= control target key start
LH: loop header
LB: loop body
LE: loop exit
PB: predicated region body
PF: predicated region fallthrough
CT: control target
= control target key end

     0   :  { %8 = vsyncpa [#allocation5], 0  ;;  %s182_s0 = inlined_call_operand.<no memory space> [shape: s32[1], index: 0, kind: input, shape index: {}]   ;;  %s183_s1 = inlined_call_operand.hbm [shape: f32[16,128], index: 1, kind: input, shape index: {}]   ;;  %s184_s2 = inlined_call_operand.hbm [shape: f32[16,128], index: 2, kind: output, shape index: {}]  }
   0x1   :  { %9 = vsyncpa [#allocation6], 0  ;;  %s14_s11 = sshll.u32 %s183_s1, 4  ;;  %s148_s12 = smov [#allocation4]   ;;  %s15_s11 = int_to_ptr.hbm [resolvable:$true] %s14_s11 }
   0x2   :  { %s16_s13 = sshll.u32 %s148_s12, 4  ;;  %s149_s14 = smov 128   ;;  %s17_s13 = int_to_ptr.vmem [resolvable:$true] %s16_s13 }
   0x3   :  { %s150_s15 = smov 8  }
   0x4   :  { %22 = dma.hbm_to_vmem [thread:$0]  %s15_s11, 256, %s17_s13, [#allocation5], %s149_s14, %s149_s14, %s150_s15  }
   0x5   :  { %144 = dma.done.wait [#allocation5], 256  }
   0x6   :  { %145 = vsyncadd [#allocation5], 4294967040  ;;  %v28_v0 = vlaneseq  ;;  %s41_s18 = smul.u32 2654435769, %s182_s0  ;;  %v67_v30 = vld [vmem:[#allocation4] sm:$0xff]  ;;  %v68_v33 = vld [vmem:[#allocation4 + $0x8] sm:$0xff] }
   0x7   :  { %s151_s0 = smov [#allocation7]   ;;  %s79_s21 = sshll.u32 %s184_s2, 4  ;;  %s80_s21 = int_to_ptr.hbm [resolvable:$true] %s79_s21 }
   0x8   :  { %v29_v1 = vshrl.u32 %v28_v0, 7  ;;  %v35_v2 = vand.u32 127, %v28_v0  ;;  %v42_v5 = vstv %s41_s18  ;;  %s77_s1 = sshll.u32 %s151_s0, 4  ;;  %s78_s1 = int_to_ptr.vmem [resolvable:$true] %s77_s1 }
   0xa   :  { %v36_v3 = vmul.u32 128, %v29_v1  ;;  %v30_v4 = vadd.s32 8, %v29_v1 }
   0xc   :  { %v38_v6 = vadd.s32 %v36_v3, %v35_v2  ;;  %v37_v7 = vmul.u32 128, %v30_v4 }
   0xe   :  { %v43_v8 = vxor.u32 %v42_v5, %v38_v6  ;;  %v39_v9 = vadd.s32 %v37_v7, %v35_v2 }
  0x10   :  { %v45_v10 = vmul.u32 2246822507, %v43_v8  ;;  %v44_v11 = vxor.u32 %v42_v5, %v39_v9 }
  0x12   :  { %v47_v12 = vshra.s32 %v45_v10, 15  ;;  %v46_v13 = vmul.u32 2246822507, %v44_v11 }
  0x14   :  { %v49_v14 = vxor.u32 %v47_v12, %v45_v10  ;;  %v48_v15 = vshra.s32 %v46_v13, 15 }
  0x16   :  { %v51_v16 = vmul.u32 3266489909, %v49_v14  ;;  %v50_v17 = vxor.u32 %v48_v15, %v46_v13 }
  0x18   :  { %v53_v18 = vshra.s32 %v51_v16, 16  ;;  %v52_v19 = vmul.u32 3266489909, %v50_v17 }
  0x1a   :  { %v55_v20 = vxor.u32 %v53_v18, %v51_v16  ;;  %v54_v21 = vshra.s32 %v52_v19, 16 }
  0x1c   :  { %v57_v22 = vand.u32 8388607, %v55_v20  ;;  %v56_v23 = vxor.u32 %v54_v21, %v52_v19 }
  0x1e   :  { %v59_v24 = vcvt.s32.f32 %v57_v22  ;;  %v58_v25 = vand.u32 8388607, %v56_v23 }
  0x20   :  { %v61_v26 = vmul.f32 1.1920929e-07, %v59_v24  ;;  %v60_v27 = vcvt.s32.f32 %v58_v25 }
  0x22   :  { %v63_v28 = vmul.f32 0.12, %v61_v26  ;;  %v62_v29 = vmul.f32 1.1920929e-07, %v60_v27 }
  0x24   :  { %v65_v31 = vadd.f32 0.94, %v63_v28  ;;  %v64_v32 = vmul.f32 0.12, %v62_v29 }
  0x26   :  { %v69_v34 = vmul.f32 %v67_v30, %v65_v31  ;;  %v66_v35 = vadd.f32 0.94, %v64_v32 }
  0x28   :  { %71 = vst [vmem:[#allocation7] sm:$0xff] %v69_v34  ;;  %v70_v36 = vmul.f32 %v68_v33, %v66_v35 }
  0x2a   :  { %72 = vst [vmem:[#allocation7 + $0x8] sm:$0xff] %v70_v36 }
  0x2b   :  { %85 = dma.vmem_to_hbm [thread:$0]  %s78_s1, 256, %s80_s21, [#allocation6], %s149_s14, %s149_s14, %s150_s15  }
  0x2c   :  { %146 = dma.done.wait [#allocation6], 256  }
  0x2d   :  { %147 = vsyncadd [#allocation6], 4294967040 }
  0x2e   :  { %90 = vsyncpa [#allocation5], 1 }
  0x2f   :  { %91 = vsyncpa [#allocation6], 1 }

</bundles_post_ra>
